<compile_context>
chip_gen: v5e
topology: v5e:2x2
jax: 0.10.0
libtpu: 0.0.40
codegen_flags: <defaults>
</compile_context>

<pallas_src>
import functools

import jax
import jax.numpy as jnp
from jax.experimental import pallas as pl
from jax.experimental.pallas import tpu as pltpu


def _round_up(x, m):
    return ((x + m - 1) // m) * m


def _im2col_nchw(x, patch_size, stride, dtype):
    """Extract conv patches. x: (B,C,H,W) -> (M = B*oh*ow, K = C*ph*pw).

    Last-axis flattening order is (C, kh, kw), matching the flattened PyTorch
    Conv2d weight (E, C, kh, kw) -> (E, C*kh*kw).  The cast to `dtype` is
    applied *before* the transpose so XLA fuses cast + reorder into one pass.
    """
    B, C, H, W = x.shape
    ph, pw = patch_size
    sh, sw = stride
    oh = (H - ph) // sh + 1
    ow = (W - pw) // sw + 1

    x = x.astype(dtype)

    if (ph, pw) == (sh, sw) and H == oh * ph and W == ow * pw:
        # Non-overlapping patches: pure reshape/transpose, no gather, no
        # HBM inflation.
        p = x.reshape(B, C, oh, ph, ow, pw)
        p = jnp.transpose(p, (0, 2, 4, 1, 3, 5))        # (B, oh, ow, C, ph, pw)
        return p.reshape(B * oh * ow, C * ph * pw), (oh, ow)

    # Overlapping patches: gather-based im2col (materialized by XLA).
    # TODO(synk): fuse this into the kernel via strided DMA (see header note).
    rows = jnp.arange(oh)[:, None] * sh + jnp.arange(ph)[None, :]   # (oh, ph)
    cols = jnp.arange(ow)[:, None] * sw + jnp.arange(pw)[None, :]   # (ow, pw)
    xr = x[:, :, rows, :]                               # (B, C, oh, ph, W)
    xc = xr[:, :, :, :, cols]                           # (B, C, oh, ph, ow, pw)
    p = jnp.transpose(xc, (0, 2, 4, 1, 3, 5))           # (B, oh, ow, C, ph, pw)
    return p.reshape(B * oh * ow, C * ph * pw), (oh, ow)


def _patch_embed_kernel(x_ref, w_ref, b_ref, o_ref):
    # x_ref: (tm, K)  patch-matrix tile (compute dtype, e.g. bf16)
    # w_ref: (K, tn)  flattened conv-weight tile (compute dtype), VMEM-resident
    # b_ref: (1, tn)  conv bias tile (f32), VMEM-resident
    # o_ref: (tm, tn) output tile
    acc = jnp.dot(x_ref[...], w_ref[...], preferred_element_type=jnp.float32)
    o_ref[...] = (acc + b_ref[...]).astype(o_ref.dtype)


def _patch_embed_matmul(patches, w_ke, b_1e, *, out_dtype, tm=512, tn=None):
    """(M, K) @ (K, Ep) + bias -> (M, Ep) via a tiled Pallas matmul."""
    M, K = patches.shape
    Kw, Ep = w_ke.shape
    assert Kw == K, (Kw, K)

    # Default: whole embedding width per tile -> weight DMAed exactly once.
    tn = Ep if tn is None else min(tn, Ep)
    # Avoid silently dropping output columns (review correctness concern).
    assert Ep % tn == 0, f"tn={tn} must divide padded embed dim {Ep}"

    # --- choose tm --------------------------------------------------------
    tm = max(8, min(_round_up(tm, 8), _round_up(M, 8)))
    # Keep at least two M steps when possible so a parallel grid axis can be
    # sharded across the two TensorCores on v7x.
    if pl.cdiv(M, tm) < 2 and M > 8:
        tm = _round_up(-(-M // 2), 8)

    # Conservative VMEM budget (double-buffered inputs + output), safe under
    # v7x's 32 MiB default scoped VMEM as well as v5e/v6e.
    in_b = jnp.dtype(patches.dtype).itemsize
    out_b = jnp.dtype(out_dtype).itemsize

    def _ws_bytes(tm_):
        return (2 * (tm_ * K * in_b + K * tn * in_b + tn * 4)
                + 2 * tm_ * tn * out_b)

    while _ws_bytes(tm) > 24 * 1024 * 1024 and tm > 64:
        tm = max(8, _round_up(tm // 2, 8))

    ni = pl.cdiv(M, tm)      # M tiles (tail handled by masked OOB stores)
    nj = Ep // tn            # E tiles (1 in the default, weight-resident case)

    # j (embedding columns) is the OUTER axis: the weight block index only
    # changes every ni steps, so with nj == 1 it is fetched exactly once.
    grid = (nj, ni)

    return pl.pallas_call(
        _patch_embed_kernel,
        out_shape=jax.ShapeDtypeStruct((M, Ep), out_dtype),
        grid_spec=pltpu.PrefetchScalarGridSpec(
            num_scalar_prefetch=0,
            grid=grid,
            in_specs=[
                pl.BlockSpec((tm, K), lambda j, i: (i, 0)),   # patch tile
                pl.BlockSpec((K, tn), lambda j, i: (0, j)),   # weight (resident)
                pl.BlockSpec((1, tn), lambda j, i: (0, j)),   # bias (resident)
            ],
            out_specs=pl.BlockSpec((tm, tn), lambda j, i: (i, j)),
        ),
        compiler_params=pltpu.CompilerParams(
            dimension_semantics=("parallel", "parallel"),
        ),
    )(patches, w_ke, b_1e)


class PatchEmbedNew:
    """Pallas-backed equivalent of PatchEmbed_new.forward.

    Parameter preprocessing (flatten / transpose / pad of the conv weight and
    bias) is done ONCE at construction, not per forward call.
    """

    def __init__(self, weight, bias, patch_size, stride, *,
                 compute_dtype=jnp.bfloat16, out_dtype=None,
                 tm=512, tn=None):
        E, C, ph, pw = weight.shape
        K = C * ph * pw
        Ep = _round_up(E, 128)           # lane-dense output width (no-op if E%128==0)

        w_flat = jnp.transpose(weight.reshape(E, K)).astype(compute_dtype)  # (K, E)
        b_flat = bias.astype(jnp.float32).reshape(1, E)
        if Ep != E:
            w_flat = jnp.pad(w_flat, ((0, 0), (0, Ep - E)))
            b_flat = jnp.pad(b_flat, ((0, 0), (0, Ep - E)))

        self.w_ke = w_flat               # (K, Ep), compute dtype
        self.b_1e = b_flat               # (1, Ep), f32
        self.embed_dim = E
        self.patch_size = (ph, pw)
        self.stride = tuple(stride)
        self.compute_dtype = compute_dtype
        self.out_dtype = out_dtype
        self.tm = tm
        self.tn = tn

    def __call__(self, x):
        B = x.shape[0]
        out_dtype = self.out_dtype if self.out_dtype is not None else x.dtype

        patches, (oh, ow) = _im2col_nchw(
            x, self.patch_size, self.stride, self.compute_dtype)      # (M, K)
        out = _patch_embed_matmul(
            patches, self.w_ke, self.b_1e,
            out_dtype=out_dtype, tm=self.tm, tn=self.tn)              # (M, Ep)

        E = self.embed_dim
        if out.shape[1] != E:
            out = out[:, :E]
        return out.reshape(B, oh * ow, E)


def patch_embed_forward(x, weight, bias, patch_size, stride, **kwargs):
    """One-shot convenience wrapper (no parameter caching)."""
    return PatchEmbedNew(weight, bias, patch_size, stride, **kwargs)(x)


if __name__ == "__main__":
    def reference(x, weight, bias, stride):
        B = x.shape[0]
        E = weight.shape[0]
        conv = jax.lax.conv_general_dilated(
            x, weight, window_strides=stride, padding="VALID",
            dimension_numbers=("NCHW", "OIHW", "NCHW"),
        ) + bias.reshape(1, E, 1, 1)
        return jnp.transpose(conv.reshape(B, E, -1), (0, 2, 1))

    key = jax.random.PRNGKey(0)

    configs = [
        # (B, C, H, W, patch, stride, E) — overlapping conv (stride < patch)
        (2, 2, 16, 16, (4, 4), (2, 2), 32),
        # non-overlapping (stride == patch): reshape-only im2col path
        (2, 2, 16, 16, (4, 4), (4, 4), 32),
    ]
    for (B, C, H, W, patch_size, stride, E) in configs:
        kx, kw, kb, key = jax.random.split(key, 4)
        x = jax.random.normal(kx, (B, C, H, W), dtype=jnp.float32)
        weight = jax.random.normal(
            kw, (E, C, patch_size[0], patch_size[1]), dtype=jnp.float32) * 0.02
        bias = jax.random.normal(kb, (E,), dtype=jnp.float32) * 0.02

        ref = reference(x, weight, bias, stride)

        # f32 compute path — tight numerical check.
        mod_f32 = PatchEmbedNew(weight, bias, patch_size, stride,
                                compute_dtype=jnp.float32)
        out_f32 = jax.block_until_ready(mod_f32(x))
        assert out_f32.shape == ref.shape, (out_f32.shape, ref.shape)
        assert jnp.allclose(out_f32, ref, atol=1e-4, rtol=1e-4), \
            float(jnp.max(jnp.abs(out_f32 - ref)))

        # bf16 MXU path (default) — loosened tolerance for bf16 inputs.
        mod_bf16 = PatchEmbedNew(weight, bias, patch_size, stride)
        out_bf16 = jax.block_until_ready(mod_bf16(x))
        assert out_bf16.shape == ref.shape, (out_bf16.shape, ref.shape)
        assert jnp.allclose(out_bf16, ref, atol=1e-2, rtol=1e-2), \
            float(jnp.max(jnp.abs(out_bf16 - ref)))

        # bf16 output path (optional writeback-traffic saver).
        mod_bf16o = PatchEmbedNew(weight, bias, patch_size, stride,
                                  out_dtype=jnp.bfloat16)
        out_bf16o = jax.block_until_ready(mod_bf16o(x))
        assert out_bf16o.shape == ref.shape, (out_bf16o.shape, ref.shape)
        assert jnp.allclose(out_bf16o.astype(jnp.float32), ref,
                            atol=2e-2, rtol=2e-2), \
            float(jnp.max(jnp.abs(out_bf16o.astype(jnp.float32) - ref)))

    print("KERNEL_OK")
</pallas_src>

<mosaic_0001>
module attributes {stable_mosaic.version = 11 : i64} {
  func.func @_patch_embed_kernel(%arg0: i32, %arg1: i32, %arg2: memref<56x32xf32, #tpu.memory_space<vmem>>, %arg3: memref<32x128xf32, #tpu.memory_space<vmem>>, %arg4: memref<1x128xf32, #tpu.memory_space<vmem>>, %arg5: memref<56x128xf32, #tpu.memory_space<vmem>>) attributes {dimension_semantics = [#tpu.dimension_semantics<parallel>, #tpu.dimension_semantics<parallel>], iteration_bounds = array<i64: 1, 2>, scalar_prefetch = 0 : i64, scratch_operands = 0 : i64, tpu.core_type = #tpu.core_type<tc>, window_params = [{transform_indices = @transform_0, window_bounds = array<i64: 56, 32>}, {transform_indices = @transform_1, window_bounds = array<i64: 32, 128>}, {transform_indices = @transform_2, window_bounds = array<i64: 1, 128>}, {transform_indices = @transform_3, window_bounds = array<i64: 56, 128>}]} {
    %c0 = arith.constant 0 : index
    %c0_0 = arith.constant 0 : index
    %0 = vector.load %arg2[%c0, %c0_0] : memref<56x32xf32, #tpu.memory_space<vmem>>, vector<56x32xf32>
    %c0_1 = arith.constant 0 : index
    %c0_2 = arith.constant 0 : index
    %1 = vector.load %arg3[%c0_1, %c0_2] : memref<32x128xf32, #tpu.memory_space<vmem>>, vector<32x128xf32>
    %cst = arith.constant dense<0.000000e+00> : vector<56x128xf32>
    %2 = tpu.matmul %0, %1, %cst {dimension_numbers = #tpu.dot_dimension_numbers<[1], [0], [0], [1], [0, 0, 1, 1], [], []>} : vector<56x32xf32>, vector<32x128xf32>, vector<56x128xf32> -> vector<56x128xf32>
    %c0_3 = arith.constant 0 : index
    %c0_4 = arith.constant 0 : index
    %3 = vector.load %arg4[%c0_3, %c0_4] : memref<1x128xf32, #tpu.memory_space<vmem>>, vector<1x128xf32>
    %4 = vector.broadcast %3 : vector<1x128xf32> to vector<56x128xf32>
    %5 = arith.addf %2, %4 : vector<56x128xf32>
    %c0_5 = arith.constant 0 : index
    %c0_6 = arith.constant 0 : index
    %6 = vector.load %arg5[%c0_5, %c0_6] : memref<56x128xf32, #tpu.memory_space<vmem>>, vector<56x128xf32>
    tpu.vector_store %arg5[%c0_5, %c0_6], %5 {strides = array<i32>} : memref<56x128xf32, #tpu.memory_space<vmem>>, vector<56x128xf32>,
    return
  }
  func.func @transform_0(%arg0: i32, %arg1: i32) -> (i32, i32) {
    %c0_i32 = arith.constant 0 : i32
    %c0_i32_0 = arith.constant 0 : i32
    return %arg1, %c0_i32 : i32, i32
  }
  func.func @transform_1(%arg0: i32, %arg1: i32) -> (i32, i32) {
    %c0_i32 = arith.constant 0 : i32
    %c0_i32_0 = arith.constant 0 : i32
    return %c0_i32, %arg0 : i32, i32
  }
  func.func @transform_2(%arg0: i32, %arg1: i32) -> (i32, i32) {
    %c0_i32 = arith.constant 0 : i32
    %c0_i32_0 = arith.constant 0 : i32
    return %c0_i32, %arg0 : i32, i32
  }
  func.func @transform_3(%arg0: i32, %arg1: i32) -> (i32, i32) {
    %c0_i32 = arith.constant 0 : i32
    return %arg1, %arg0 : i32, i32
  }
}

</mosaic_0001>

<bundles_post_ra>
// kernel: tpu_custom_call.1
= control target key start
LH: loop header
LB: loop body
LE: loop exit
PB: predicated region body
PF: predicated region fallthrough
CT: control target
= control target key end

     0   :  { %8 = vsyncpa [#allocation3], 0  ;;  %s818_s0 = inlined_call_operand.vmem [shape: f32[98,32], index: 0, kind: input, shape index: {}]   ;;  %s819_s1 = inlined_call_operand.vmem [shape: f32[32,128], index: 1, kind: input, shape index: {}]   ;;  %s820_s2 = inlined_call_operand.vmem [shape: f32[1,128], index: 2, kind: input, shape index: {}]   ;;  %s821_s3 = inlined_call_operand.hbm [shape: f32[98,128], index: 3, kind: output, shape index: {}]  }
   0x1   :  { %10 = vsyncpa [#allocation3 + $0x1], 0  ;;  %s653_s12 = smov 0   ;;  %s655_s13 = smov 0  }
   0x2   :  { %s657_s14 = smov 0   ;;  %s659_s15 = smov 0  }
   0x3   :  { %s661_s16 = smov 0   ;;  %s663_s17 = smov 0  }
   0x4 LB: > { %s446_s18 = sadd.s32 4294967295, %s628_s17   ;;  %s447_s19 = sadd.s32 4294967294, %s628_s17   ;;  %s628_s17 = sphi %s663_s17, %s16_s17   ;;  %s624_s16 = sphi %s661_s16, %s829_s16   ;;  %s620_s15 = sphi %s659_s15, %s828_s15   ;;  %s616_s14 = sphi %s657_s14, %s827_s14   ;;  %s612_s13 = sphi %s655_s13, %s826_s13   ;;  %s608_s12 = sphi %s653_s12, %s825_s12  }
   0x5   : > { %s25_s20 = sadd.s32 1, %s624_s16  ;;  %s115_s21 = sadd.s32 1, %s616_s14 }
   0x6   : > { %p26_p0 = scmp.ge.s32.totalorder %s25_s20, 2  ;;  %p125_p1 = scmp.ne.s32.totalorder %s616_s14, %s612_s13 }
   0x7   : > { %p126_p2 = scmp.eq.s32.totalorder %s446_s18, 1  ;;  %p131_p3 = scmp.ne.s32.totalorder %s612_s13, %s608_s12 }
   0x8   : > { %s831_s20 = smov (%p26_p0, %s25_s20), 0  ;;  %p132_p5 = scmp.eq.s32.totalorder %s447_s19, 1 }
   0x9   : > { %p693_p4 = por %p126_p2, %p125_p1  ;;  %s110_s23 = ssub.s32 %s624_s16, %s831_s20 }
   0xa   : > { %p452_p6 = scmp.ge.s32.totalorder %s628_s17, 1  ;;  %p113_p7 = scmp.eq.s32.totalorder %s110_s23, 0 }
   0xb   : > { %p700_p8 = por %p132_p5, %p131_p3  ;;  %p180_p9 = scmp.lt.s32.totalorder %s628_s17, 3 }
   0xc   : > { %s706_s25 = scalar_select %p113_p7, %s616_s14, %s115_s21  }
   0xd   : > { %p181_p10 = pnand %p452_p6, %p180_p9 }
   0xe   : > { %s715_s30 = smul.u32 (!%p181_p10), 7, %s620_s15  ;;  %s212_s19 = sand.u32 (!%p181_p10), 1, %s612_s13  }
   0xf   : > { %184 = sbr.rel (%p181_p10) target bundleno = 203 (0xcb), region = 32  ;;  %s752_s28 = scalar_lea.sflag (!%p181_p10), [#allocation3], %s212_s19 }
  0x10   : > { %p220_p11 = scmp.lt.s32.totalorder (!%p181_p10), %s715_s30, 12  ;;  %s481_s21 = smul.u32 (!%p181_p10), 56, %s212_s19 }
  0x12   : > { %s741_s27 = scalar_lea.vmem (!%p181_p10), [#allocation2], %s481_s21 }
  0x14   : > { %v251_v0 = vld [vmem:[%s819_s1 + $0x18] sm:$0xff]  ;;  %v250_v1 = vld [vmem:[%s819_s1 + $0x10] sm:$0xff]  ;;  %v249_v2 = vld [vmem:[%s819_s1 + $0x8] sm:$0xff]  ;;  %s221_s8 = scalar_select %p220_p11, %s715_s30, 12  ;;  %vm256_vm0 = vcmask 261120  }
  0x15   : > { %471 = vmatpush.msra.mxu3 %v251_v0  ;;  %290 = vmatpush.msra.mxu0 %v251_v0  ;;  %v248_v3 = vld [vmem:[%s819_s1] sm:$0xff]  ;;  %s332_s29 = ssub.s32 (%p693_p4), 13, %s715_s30 }
  0x16   : > { %469 = vmatpush.msra.mxu1 %v251_v0  ;;  %470 = vmatpush.msra.mxu2 %v251_v0  ;;  %s453_s9 = sshll.u32 %s221_s8, 3  ;;  %v538_v11 = vld [vmem:[%s820_s2] ss:$0 sm:$0xff]  ;;  %p333_p12 = scmp.lt.s32.totalorder (%p693_p4), %s332_s29, 7 }
  0x17   : > { %474 = vmatpush.msra.mxu3 %v250_v1  ;;  %291 = vmatpush.msra.mxu0 %v250_v1  ;;  %s223_s18 = scalar_lea.vmem %s818_s0, %s453_s9 }
  0x18   : > { %472 = vmatpush.msra.mxu1 %v250_v1  ;;  %473 = vmatpush.msra.mxu2 %v250_v1  ;;  %v246_v4 = vld [vmem:[%s223_s18 + $0x28] sm:$0xff]  ;;  %v241_v5 = vld [vmem:[%s223_s18] sm:$0xff]  ;;  %v243_v6 = vld [vmem:[%s223_s18 + $0x10] sm:$0xff] }
  0x19   : > { %477 = vmatpush.msra.mxu3 %v249_v2  ;;  %292 = vmatpush.msra.mxu0 %v249_v2  ;;  %v245_v7 = vld [vmem:[%s223_s18 + $0x20] sm:$0xff]  ;;  %v247_v8 = vld [vmem:[%s223_s18 + $0x30] sm:$0xff]  ;;  %v242_v9 = vld [vmem:[%s223_s18 + $0x8] sm:$0xff] }
  0x1a   : > { %475 = vmatpush.msra.mxu1 %v249_v2  ;;  %476 = vmatpush.msra.mxu2 %v249_v2  ;;  %v244_v10 = vld [vmem:[%s223_s18 + $0x18] sm:$0xff] }
  0x1b   : > { %480 = vmatpush.msra.mxu3 %v248_v3  ;;  %293 = vmatpush.msra.mxu0 %v248_v3 }
  0x1c   : > { %478 = vmatpush.msra.mxu1 %v248_v3  ;;  %479 = vmatpush.msra.mxu2 %v248_v3 }
  0x1d   : > { %459 = vmatmul.msk.f32.vlgmr.msra.gmra.mxu3 %vm256_vm0, %v246_v4  ;;  %454 = vmatmul.msk.f32.vlgmr.msra.gmra.mxu0 %vm256_vm0, %v241_v5 }
  0x1e   : > { %456 = vmatmul.msk.f32.vlgmr.msra.gmra.mxu1 %vm256_vm0, %v243_v6  ;;  %458 = vmatmul.msk.f32.vlgmr.msra.gmra.mxu2 %vm256_vm0, %v245_v7 }
  0x25   : > { %460 = vmatmul.msk.f32.gmra.mxu3 %vm256_vm0, %v247_v8  ;;  %455 = vmatmul.msk.f32.gmra.mxu0 %vm256_vm0, %v242_v9 }
  0x26   : > { %457 = vmatmul.msk.f32.gmra.mxu1 %vm256_vm0, %v244_v10 }
  0x9a   : > { %v295_v12 = vpop.f32.mrf.mxu0 }
  0x9b   : > { %v296_v13 = vadd.f32 %v538_v11, %v295_v12  ;;  %v301_v14 = vpop.f32.mrf.mxu1 }
  0x9c   : > { %v302_v15 = vadd.f32 %v538_v11, %v301_v14 }
  0x9d   : > { %316 = vst [vmem:[%s741_s27] sm:$0xff] %v296_v13 }
  0x9e   : > { %318 = vst [vmem:[%s741_s27 + $0x10] sm:$0xff] %v302_v15 }
  0xa0   : > { %v310_v16 = vpop.f32.mrf.mxu3 }
  0xa1   : > { %v311_v17 = vadd.f32 %v538_v11, %v310_v16  ;;  %v307_v18 = vpop.f32.mrf.mxu2 }
  0xa2   : > { %v298_v19 = vpop.f32.mrf.mxu0  ;;  %v308_v20 = vadd.f32 %v538_v11, %v307_v18 }
  0xa3   : > { %321 = vst [vmem:[%s741_s27 + $0x28] sm:$0xff] %v311_v17  ;;  %v299_v21 = vadd.f32 %v538_v11, %v298_v19  ;;  %v304_v22 = vpop.f32.mrf.mxu1 }
  0xa4   : > { %v305_v23 = vadd.f32 %v538_v11, %v304_v22  ;;  %320 = vst [vmem:[%s741_s27 + $0x20] sm:$0xff] %v308_v20 }
  0xa5   : > { %317 = vst [vmem:[%s741_s27 + $0x8] sm:$0xff] %v299_v21 }
  0xa6   : > { %319 = vst [vmem:[%s741_s27 + $0x18] sm:$0xff] %v305_v23 }
  0xa7   : > { %330 = sbr.rel (!%p693_p4) target bundleno = 203 (0xcb), region = 36 }
  0xa8   : > { %v313_v24 = vpop.f32.mrf.mxu3 }
  0xa9   : > { %v314_v25 = vadd.f32 %v538_v11, %v313_v24 }
  0xab   : > { %322 = vst [vmem:[%s741_s27 + $0x30] sm:$0xff] %v314_v25 }
  0xac   : > { %s833_s29 = smov (!%p333_p12, %s332_s29), 7 }
  0xad   : > { %s461_s4 = sshll.u32 %s833_s29, 3 }
  0xae   : > { %s336_s5 = ssub.s32 56, %s461_s4 }
  0xaf   : > { %s337_s6 = sshll.u32 %s336_s5, 4 }
  0xb0   : > { %338 = vsyncadd %s752_s28, %s337_s6  ;;  %p761_p13 = scmp.ne.s32.totalorder %s461_s4, 0  ;;  %s468_s22 = smul.u32 56, %s620_s15 }
  0xb1   : > { %s344_s8 = sshll.u32 %s741_s27, 4  ;;  %s465_s30 = sshll.u32 %s833_s29, 7  ;;  %s771_s8 = int_to_ptr.vmem [resolvable:$true] %s344_s8 }
  0xb2   : > { %s342_s11 = scalar_lea.hbm %s821_s3, %s468_s22  ;;  %s539_s19 = sshra.s32 %s771_s8, 4  ;;  %s540_s19 = int_to_ptr.vmem [resolvable:$true] %s539_s19 }
  0xb3   : > { %s346_s18 = sshll.u32 %s342_s11, 4  ;;  %s541_s21 = sshrl.u32 %s465_s30, 4  ;;  %s773_s18 = int_to_ptr.hbm [resolvable:$true] %s346_s18 }
  0xb4   : > { %s546_s23 = scalar_lea.vmem %s540_s19, %s541_s21  ;;  %s630_s15 = smov [#allocation2]  }
  0xb5   : > { %p547_p0 = scmp.ne.s32.totalorder %s540_s19, %s546_s23  ;;  %s550_s26 = scalar_lea.vmem %s630_s15, 112 }
  0xb6   : > { %p552_p3 = scmp.lt.s32.totalorder %s550_s26, %s546_s23 }
  0xb7   : > { %p548_p1 = pnand %p547_p0, %p761_p13 }
  0xb9   : > { %p549_p2 = pneg %p548_p1 }
  0xbb   : > { %p554_p4 = pnand %p552_p3, %p549_p2 }
  0xbd   : > { %557 = shalt.err (!%p554_p4)
}
  0xbe   : > { %s558_s27 = sshra.s32 %s773_s18, 4  ;;  %s569_s22 = scalar_lea.hbm %s821_s3, 104  ;;  %s559_s27 = int_to_ptr.hbm [resolvable:$true] %s558_s27 }
  0xbf   : > { %s565_s4 = scalar_lea.hbm %s559_s27, %s541_s21  ;;  %p570_p9 = scmp.lt.s32.totalorder %s559_s27, %s821_s3 }
  0xc0   : > { %p566_p5 = scmp.ne.s32.totalorder %s559_s27, %s565_s4  ;;  %p571_p10 = scmp.lt.s32.totalorder %s569_s22, %s565_s4 }
  0xc2   : > { %p567_p6 = pnand %p566_p5, %p761_p13  ;;  %p572_p11 = por %p571_p10, %p570_p9 }
  0xc4   : > { %p568_p7 = pneg %p567_p6 }
  0xc6   : > { %p573_p12 = pnand %p572_p11, %p568_p7 }
  0xc8   : > { %576 = shalt.err (!%p573_p12)
}
  0xc9   : > { %s631_s11 = smov 128   ;;  %s632_s19 = smov 8  }
  0xca   : > { %352 = dma.vmem_to_hbm [thread:$0]  (%p761_p13), %s771_s8, %s465_s30, %s773_s18, %s752_s28, %s631_s11, %s631_s11, %s632_s19  }
  0xcb PF: > { %p487_p0 = scmp.ge.s32.totalorder %s628_s17, 2  ;;  %s361_s21 = sand.u32 1, %s608_s12  }
  0xcc   : > { %s362_s23 = scalar_lea.sflag [#allocation3], %s361_s21 }
  0xcd   : > { %p484_p1 = pnand %p487_p0, %p700_p8 }
  0xcf   : > { %p485_p2 = pneg %p484_p1 }
  0xd1   : > { %603 = dma.done.wait (%p485_p2), %s362_s23, 896  }
  0xd2   : > { %605 = vsyncadd (%p485_p2), %s362_s23, 4294966400  ;;  %s16_s17 = sadd.s32 1, %s628_s17   ;;  %s825_s12 = smov %s612_s13 }
  0xd3   : > { %p13_p3 = scmp.ge.s32.totalorder %s16_s17, 4   ;;  %s826_s13 = smov %s616_s14 }
  0xd4   : > { %s827_s14 = smov %s706_s25  ;;  %s828_s15 = smov %s624_s16 }
  0xd5   : > { %s829_s16 = smov %s831_s20  ;;  %15 = sbr.rel (!%p13_p3) target bundleno = 4 (0x4), region = 73 }
  0xda   :  { %368 = vsyncpa [#allocation3], 1 }
  0xdb   :  { %370 = vsyncpa [#allocation3 + $0x1], 1 }

</bundles_post_ra>
